<compile_context>
chip_gen: v7x
topology: tpu7x:2x2x1
jax: 0.10.0
libtpu: 0.0.40
codegen_flags: <defaults>
</compile_context>

<pallas_src>
import jax
import jax.numpy as jnp
from jax.experimental import pallas as pl
from jax.experimental.pallas import tpu as pltpu


def _small_cell_kernel(x_ref, w1_ref, b1_ref, w2_ref, b2_ref, out_ref):
    """Fused Linear -> ReLU -> Linear for one batch tile.

    x_ref  : (TB, Din)       MXU dtype (f32 or bf16)
    w1_ref : (Din, Dhid)     transposed nn.Linear weight 1 (MXU dtype)
    b1_ref : (1, Dhid)       f32
    w2_ref : (Dhid, Doutp)   transposed (and lane-padded) nn.Linear weight 2
    b2_ref : (1, Doutp)      f32
    out_ref: (TB, Doutp)     f32
    """
    h = jnp.dot(x_ref[...], w1_ref[...], preferred_element_type=jnp.float32)
    h = jnp.maximum(h + b1_ref[...], 0.0)
    out = jnp.dot(h.astype(w2_ref.dtype), w2_ref[...],
                  preferred_element_type=jnp.float32)
    out_ref[...] = (out + b2_ref[...]).astype(out_ref.dtype)


def _round_up(n, m):
    return ((n + m - 1) // m) * m


_MAX_TILE = 2048          # ~3 MiB double-buffered at Din=64/Dout=128 f32
_SPLIT_THRESHOLD = 512    # only split the batch when each tile is >= 256 rows


def _choose_tiling(batch):
    """Return (batch_tile, padded_batch).

    Small/medium batches: one grid step (tile = batch rounded up to 8 sublanes).
    Large batches: largest tile <= _MAX_TILE that still yields >= 2 steps, so a
    v7x megacore can shard the "parallel" axis; batch padded to a tile multiple.
    """
    b8 = max(8, _round_up(batch, 8))
    if b8 >= _SPLIT_THRESHOLD:
        for tb in (_MAX_TILE, 1024, 512, 256):
            padded = _round_up(b8, tb)
            if padded // tb >= 2:
                return tb, padded
    return b8, b8


def make_small_cell(w1, b1, w2, b2, mxu_dtype=jnp.float32):
    """Prepare parameters once and return a jitted forward(x).

    w1: (Dhid, Din), b1: (Dhid,)   -- nn.Linear(input_size, input_size // 4)
    w2: (Dout, Dhid), b2: (Dout,)  -- nn.Linear(input_size // 4, 4 * hidden)
    """
    Dhid, Din = w1.shape
    Dout = w2.shape[0]
    Doutp = _round_up(Dout, 128)  # lane-dense output store

    # Hoisted out of the per-call path: transpose / reshape / pad exactly once.
    w1_t = jnp.asarray(w1, jnp.float32).T.astype(mxu_dtype)   # (Din, Dhid)
    b1_r = jnp.asarray(b1, jnp.float32).reshape(1, Dhid)
    w2_t = jnp.asarray(w2, jnp.float32).T.astype(mxu_dtype)   # (Dhid, Dout)
    b2_r = jnp.asarray(b2, jnp.float32).reshape(1, Dout)
    if Doutp != Dout:
        w2_t = jnp.pad(w2_t, ((0, 0), (0, Doutp - Dout)))
        b2_r = jnp.pad(b2_r, ((0, 0), (0, Doutp - Dout)))

    @jax.jit
    def forward(x):
        lead = x.shape[:-1]
        assert x.shape[-1] == Din, "last dim of x must equal input_size"
        x2 = x.reshape(-1, Din).astype(mxu_dtype)
        B = x2.shape[0]
        tb, Bp = _choose_tiling(B)
        if Bp != B:
            x2 = jnp.pad(x2, ((0, Bp - B), (0, 0)))

        grid_spec = pltpu.PrefetchScalarGridSpec(
            num_scalar_prefetch=0,
            grid=(Bp // tb,),
            in_specs=[
                pl.BlockSpec((tb, Din), lambda i: (i, 0)),       # x tile (read once)
                pl.BlockSpec((Din, Dhid), lambda i: (0, 0)),     # w1 (resident)
                pl.BlockSpec((1, Dhid), lambda i: (0, 0)),       # b1 (resident)
                pl.BlockSpec((Dhid, Doutp), lambda i: (0, 0)),   # w2 (resident)
                pl.BlockSpec((1, Doutp), lambda i: (0, 0)),      # b2 (resident)
            ],
            out_specs=pl.BlockSpec((tb, Doutp), lambda i: (i, 0)),
        )

        out = pl.pallas_call(
            _small_cell_kernel,
            out_shape=jax.ShapeDtypeStruct((Bp, Doutp), jnp.float32),
            grid_spec=grid_spec,
            compiler_params=pltpu.CompilerParams(
                dimension_semantics=("parallel",),
                # Explicit scoped-VMEM budget so max-size tiles also compile on
                # v5e (16 MiB default); well under every generation's physical VMEM.
                vmem_limit_bytes=32 * 1024 * 1024,
            ),
        )(x2, w1_t, b1_r, w2_t, b2_r)

        if Bp != B:
            out = out[:B]
        if Doutp != Dout:
            out = out[:, :Dout]
        return out.reshape(*lead, Dout)

    return forward


def _reference_forward(x, w1, b1, w2, b2):
    """Pure-JAX f32 reference matching the PyTorch module."""
    h = jnp.maximum(x @ w1.T + b1, 0.0)
    return h @ w2.T + b2


def _reference_forward_cast(x, w1, b1, w2, b2, dt):
    """Reference with the same bf16-operand / f32-accumulation casts as the kernel."""
    h = jnp.dot(x.astype(dt), w1.T.astype(dt),
                preferred_element_type=jnp.float32) + b1
    h = jnp.maximum(h, 0.0)
    return jnp.dot(h.astype(dt), w2.T.astype(dt),
                   preferred_element_type=jnp.float32) + b2


if __name__ == "__main__":
    # Shapes implied by the module: x is (batch, input_size);
    # hidden layer = input_size // 4; output = 4 * hidden_size.
    B = 16
    input_size = 64
    hidden_size = 32
    Dhid = input_size // 4          # 16
    Dout = 4 * hidden_size          # 128 (lane-dense output)

    key = jax.random.PRNGKey(0)
    kx, kw1, kb1, kw2, kb2 = jax.random.split(key, 5)

    x = jax.random.normal(kx, (B, input_size), dtype=jnp.float32)
    w1 = jax.random.normal(kw1, (Dhid, input_size), jnp.float32) / jnp.sqrt(input_size)
    b1 = 0.1 * jax.random.normal(kb1, (Dhid,), jnp.float32)
    w2 = jax.random.normal(kw2, (Dout, Dhid), jnp.float32) / jnp.sqrt(Dhid)
    b2 = 0.1 * jax.random.normal(kb2, (Dout,), jnp.float32)

    # f32 MXU path: tight comparison against the f32 reference.
    fwd_f32 = make_small_cell(w1, b1, w2, b2, mxu_dtype=jnp.float32)
    out_f32 = jax.block_until_ready(fwd_f32(x))
    ref_f32 = _reference_forward(x, w1, b1, w2, b2)
    assert out_f32.shape == (B, Dout)
    assert jnp.allclose(out_f32, ref_f32, rtol=1e-4, atol=1e-4), "f32 output mismatch"

    # bf16 MXU path (f32 accumulation): compare against a reference using the
    # same operand casts, so accumulation-order noise is the only difference.
    fwd_bf16 = make_small_cell(w1, b1, w2, b2, mxu_dtype=jnp.bfloat16)
    out_bf16 = jax.block_until_ready(fwd_bf16(x))
    ref_bf16 = _reference_forward_cast(x, w1, b1, w2, b2, jnp.bfloat16)
    assert out_bf16.shape == (B, Dout)
    assert jnp.allclose(out_bf16, ref_bf16, rtol=2e-3, atol=2e-3), "bf16 output mismatch"

    print("KERNEL_OK")
</pallas_src>

<mosaic_0001>
module attributes {stable_mosaic.version = 11 : i64} {
  func.func @_small_cell_kernel(%arg0: i32, %arg1: memref<16x64xf32, #tpu.memory_space<vmem>>, %arg2: memref<64x16xf32, #tpu.memory_space<vmem>>, %arg3: memref<1x16xf32, #tpu.memory_space<vmem>>, %arg4: memref<16x128xf32, #tpu.memory_space<vmem>>, %arg5: memref<1x128xf32, #tpu.memory_space<vmem>>, %arg6: memref<16x128xf32, #tpu.memory_space<vmem>>) attributes {dimension_semantics = [#tpu.dimension_semantics<parallel>], iteration_bounds = array<i64: 1>, scalar_prefetch = 0 : i64, scratch_operands = 0 : i64, tpu.core_type = #tpu.core_type<tc>, window_params = [{transform_indices = @transform_0, window_bounds = array<i64: 16, 64>}, {pipeline_mode = #tpu.pipeline_mode<synchronous>, transform_indices = @transform_1, window_bounds = array<i64: 64, 16>}, {pipeline_mode = #tpu.pipeline_mode<synchronous>, transform_indices = @transform_2, window_bounds = array<i64: 1, 16>}, {pipeline_mode = #tpu.pipeline_mode<synchronous>, transform_indices = @transform_3, window_bounds = array<i64: 16, 128>}, {pipeline_mode = #tpu.pipeline_mode<synchronous>, transform_indices = @transform_4, window_bounds = array<i64: 1, 128>}, {transform_indices = @transform_5, window_bounds = array<i64: 16, 128>}]} {
    %c0 = arith.constant 0 : index
    %c0_0 = arith.constant 0 : index
    %0 = vector.load %arg1[%c0, %c0_0] : memref<16x64xf32, #tpu.memory_space<vmem>>, vector<16x64xf32>
    %c0_1 = arith.constant 0 : index
    %c0_2 = arith.constant 0 : index
    %1 = vector.load %arg2[%c0_1, %c0_2] : memref<64x16xf32, #tpu.memory_space<vmem>>, vector<64x16xf32>
    %cst = arith.constant dense<0.000000e+00> : vector<16x16xf32>
    %2 = tpu.matmul %0, %1, %cst {dimension_numbers = #tpu.dot_dimension_numbers<[1], [0], [0], [1], [0, 0, 1, 1], [], []>} : vector<16x64xf32>, vector<64x16xf32>, vector<16x16xf32> -> vector<16x16xf32>
    %c0_3 = arith.constant 0 : index
    %c0_4 = arith.constant 0 : index
    %3 = vector.load %arg3[%c0_3, %c0_4] : memref<1x16xf32, #tpu.memory_space<vmem>>, vector<1x16xf32>
    %4 = vector.broadcast %3 : vector<1x16xf32> to vector<16x16xf32>
    %5 = arith.addf %2, %4 : vector<16x16xf32>
    %cst_5 = arith.constant 0.000000e+00 : f32
    %6 = vector.broadcast %cst_5 : f32 to vector<16x16xf32>
    %7 = arith.maximumf %5, %6 : vector<16x16xf32>
    %c0_6 = arith.constant 0 : index
    %c0_7 = arith.constant 0 : index
    %8 = vector.load %arg4[%c0_6, %c0_7] : memref<16x128xf32, #tpu.memory_space<vmem>>, vector<16x128xf32>
    %cst_8 = arith.constant dense<0.000000e+00> : vector<16x128xf32>
    %9 = tpu.matmul %7, %8, %cst_8 {dimension_numbers = #tpu.dot_dimension_numbers<[1], [0], [0], [1], [0, 0, 1, 1], [], []>} : vector<16x16xf32>, vector<16x128xf32>, vector<16x128xf32> -> vector<16x128xf32>
    %c0_9 = arith.constant 0 : index
    %c0_10 = arith.constant 0 : index
    %10 = vector.load %arg5[%c0_9, %c0_10] : memref<1x128xf32, #tpu.memory_space<vmem>>, vector<1x128xf32>
    %11 = vector.broadcast %10 : vector<1x128xf32> to vector<16x128xf32>
    %12 = arith.addf %9, %11 : vector<16x128xf32>
    %c0_11 = arith.constant 0 : index
    %c0_12 = arith.constant 0 : index
    %13 = vector.load %arg6[%c0_11, %c0_12] : memref<16x128xf32, #tpu.memory_space<vmem>>, vector<16x128xf32>
    tpu.vector_store %arg6[%c0_11, %c0_12], %12 {strides = array<i32>} : memref<16x128xf32, #tpu.memory_space<vmem>>, vector<16x128xf32>,
    return
  }
  func.func @transform_0(%arg0: i32) -> (i32, i32) {
    %c0_i32 = arith.constant 0 : i32
    %c0_i32_0 = arith.constant 0 : i32
    return %arg0, %c0_i32 : i32, i32
  }
  func.func @transform_1(%arg0: i32) -> (i32, i32) {
    %c0_i32 = arith.constant 0 : i32
    %c0_i32_0 = arith.constant 0 : i32
    %c0_i32_1 = arith.constant 0 : i32
    return %c0_i32, %c0_i32_0 : i32, i32
  }
  func.func @transform_2(%arg0: i32) -> (i32, i32) {
    %c0_i32 = arith.constant 0 : i32
    %c0_i32_0 = arith.constant 0 : i32
    %c0_i32_1 = arith.constant 0 : i32
    return %c0_i32, %c0_i32_0 : i32, i32
  }
  func.func @transform_3(%arg0: i32) -> (i32, i32) {
    %c0_i32 = arith.constant 0 : i32
    %c0_i32_0 = arith.constant 0 : i32
    %c0_i32_1 = arith.constant 0 : i32
    return %c0_i32, %c0_i32_0 : i32, i32
  }
  func.func @transform_4(%arg0: i32) -> (i32, i32) {
    %c0_i32 = arith.constant 0 : i32
    %c0_i32_0 = arith.constant 0 : i32
    %c0_i32_1 = arith.constant 0 : i32
    return %c0_i32, %c0_i32_0 : i32, i32
  }
  func.func @transform_5(%arg0: i32) -> (i32, i32) {
    %c0_i32 = arith.constant 0 : i32
    %c0_i32_0 = arith.constant 0 : i32
    return %arg0, %c0_i32 : i32, i32
  }
}

</mosaic_0001>

<bundles_post_ra>
// kernel: forward.1
= control target key start
LH: loop header
LB: loop body
LE: loop exit
PB: predicated region body
PF: predicated region fallthrough
CT: control target
= control target key end

     0   :  { %10 = vsyncpa [#allocation3], 0  ;;  %s551_s0 = inlined_call_operand.hbm [shape: f32[16,64], index: 0, kind: input, shape index: {}]   ;;  %s552_s1 = inlined_call_operand.hbm [shape: f32[64,16], index: 1, kind: input, shape index: {}]   ;;  %s553_s2 = inlined_call_operand.vmem [shape: f32[1,16], index: 2, kind: input, shape index: {}]   ;;  %s554_s3 = inlined_call_operand.hbm [shape: f32[16,128], index: 3, kind: input, shape index: {}]   ;;  %s555_s4 = inlined_call_operand.vmem [shape: f32[1,128], index: 4, kind: input, shape index: {}]   ;;  %s556_s5 = inlined_call_operand.hbm [shape: f32[16,128], index: 5, kind: output, shape index: {}]  }
   0x1   :  { %11 = vsyncpa [#allocation6], 0 }
   0x2   :  { %12 = vsyncpa [#allocation4], 0  ;;  %s440_s18 = smov [#allocation5]   ;;  %s441_s20 = smov [#allocation2]  }
   0x3   :  { %s30_s19 = sshll.u32 %s440_s18, 4  ;;  %s18_s21 = sshll.u32 %s441_s20, 4  ;;  %s31_s19 = int_to_ptr.vmem [resolvable:$true] %s30_s19  ;;  %s476_s21 = int_to_ptr.vmem [resolvable:$true] %s18_s21 }
   0x4   :  { %s346_s24 = scalar_lea.hbm %s552_s1, 1024 }
   0x5   :  { %p347_p0 = scmp.ne.s32.totalorder %s552_s1, %s346_s24  ;;  %p350_p1 = scmp.lt.u32.totalorder %s346_s24, %s552_s1 }
   0x7   :  { %p352_p2 = pnand %p350_p1, %p347_p0 }
   0x9   :  { %355 = shalt.err (!%p352_p2)
}
   0xa   :  { %s356_s29 = scalar_lea.vmem %s31_s19, 1024  ;;  %p361_p4 = scmp.lt.s32.totalorder %s31_s19, %s31_s19 }
   0xb   :  { %p357_p3 = scmp.ne.s32.totalorder %s31_s19, %s356_s29  ;;  %p362_p5 = scmp.lt.s32.totalorder %s356_s29, %s356_s29 }
   0xd   :  { %p363_p6 = por %p362_p5, %p361_p4 }
   0xf   :  { %p364_p7 = pnand %p363_p6, %p357_p3 }
  0x11   :  { %367 = shalt.err (!%p364_p7)
}
  0x12   :  { %s442_s30 = smov 128   ;;  %s443_s6 = smov 8  }
  0x13   :  { %36 = dma.hbm_to_vmem [thread:$0]  %s552_s1, 1024, %s31_s19, [#allocation6], %s442_s30, %s442_s30, %s443_s6  }
  0x14   :  { %s368_s11 = scalar_lea.hbm %s551_s0, 256 }
  0x15   :  { %p369_p8 = scmp.ne.s32.totalorder %s551_s0, %s368_s11  ;;  %p372_p9 = scmp.lt.u32.totalorder %s368_s11, %s551_s0 }
  0x17   :  { %p374_p10 = pnand %p372_p9, %p369_p8 }
  0x19   :  { %377 = shalt.err (!%p374_p10)
}
  0x1a   :  { %s378_s16 = scalar_lea.vmem %s476_s21, 256  ;;  %p383_p12 = scmp.lt.s32.totalorder %s476_s21, %s476_s21 }
  0x1b   :  { %p379_p11 = scmp.ne.s32.totalorder %s476_s21, %s378_s16  ;;  %p384_p13 = scmp.lt.s32.totalorder %s378_s16, %s378_s16 }
  0x1d   :  { %p385_p0 = por %p384_p13, %p383_p12 }
  0x1f   :  { %p386_p1 = pnand %p385_p0, %p379_p11 }
  0x21   :  { %389 = shalt.err (!%p386_p1)
}
  0x22   :  { %24 = dma.hbm_to_vmem [thread:$0]  %s551_s0, 256, %s476_s21, [#allocation3], %s442_s30, %s442_s30, %s443_s6  }
  0x23   :  { %s444_s18 = smov [#allocation7]   ;;  %s390_s23 = scalar_lea.hbm %s554_s3, 256 }
  0x24   :  { %s44_s19 = sshll.u32 %s444_s18, 4  ;;  %p391_p2 = scmp.ne.s32.totalorder %s554_s3, %s390_s23  ;;  %s45_s19 = int_to_ptr.vmem [resolvable:$true] %s44_s19 }
  0x25   :  { %p394_p3 = scmp.lt.u32.totalorder %s390_s23, %s554_s3 }
  0x27   :  { %p396_p4 = pnand %p394_p3, %p391_p2 }
  0x29   :  { %399 = shalt.err (!%p396_p4)
}
  0x2a   :  { %s400_s28 = scalar_lea.vmem %s45_s19, 256  ;;  %p405_p6 = scmp.lt.s32.totalorder %s45_s19, %s45_s19 }
  0x2b   :  { %p401_p5 = scmp.ne.s32.totalorder %s45_s19, %s400_s28  ;;  %p406_p7 = scmp.lt.s32.totalorder %s400_s28, %s400_s28 }
  0x2d   :  { %p407_p8 = por %p406_p7, %p405_p6 }
  0x2f   :  { %p408_p9 = pnand %p407_p8, %p401_p5 }
  0x31   :  { %411 = shalt.err (!%p408_p9)
}
  0x32   :  { %50 = dma.hbm_to_vmem [thread:$0]  %s554_s3, 256, %s45_s19, [#allocation6], %s442_s30, %s442_s30, %s443_s6  }
  0x33   :  { %434 = dma.done.wait [#allocation3], 256  }
  0x34   :  { %435 = vsyncadd [#allocation3], 4294967040 }
  0x35   :  { %436 = dma.done.wait [#allocation6], 1280  }
  0x36   :  { %437 = vsyncadd [#allocation6], 4294966016  ;;  %v64_v0 = vld [vmem:[#allocation5] sm:$0xff]  ;;  %v65_v1 = vld [vmem:[#allocation5 + $0x8] sm:$0xff]  ;;  %vm79_vm0 = vcmask 523264   ;;  %vm172_vm1 = vcmask 130048  }
  0x37   :  { %v66_v2 = vld [vmem:[#allocation5 + $0x10] sm:$0xff]  ;;  %v320_v3 = vpack.c.bf16 %v65_v1, %v64_v0  ;;  %v67_v4 = vld [vmem:[#allocation5 + $0x18] sm:$0xff]  ;;  %v68_v6 = vld [vmem:[#allocation5 + $0x20] sm:$0xff]  ;;  %s445_s9 = smov [#allocation8]  }
  0x38   :  { %v324_v5 = vpack.c.bf16 %v67_v4, %v66_v2  ;;  %v69_v7 = vld [vmem:[#allocation5 + $0x28] sm:$0xff]  ;;  %v62_v8 = vld [vmem:[#allocation2] sm:$0xff]  ;;  %v71_v11 = vld [vmem:[#allocation5 + $0x38] sm:$0xff]  ;;  %s261_s10 = sshll.u32 %s445_s9, 4  ;;  %s262_s10 = int_to_ptr.vmem [resolvable:$true] %s261_s10 }
  0x39   :  { %321 = vmatprep.subr.bf16.mxu0 %v320_v3  ;;  %310 = vmatprep.mubr.msk.f32.mxu0 %vm79_vm0, %v62_v8  ;;  %v328_v9 = vpack.c.bf16 %v69_v7, %v68_v6  ;;  %v70_v10 = vld [vmem:[#allocation5 + $0x30] sm:$0xff]  ;;  %v63_v13 = vld [vmem:[#allocation2 + $0x8] sm:$0xff]  ;;  %v163_v14 = vld [vmem:[#allocation7] sm:$0xff]  ;;  %p417_p11 = scmp.lt.s32.totalorder %s262_s10, %s262_s10 }
  0x3a   :  { %323 = vmatpush3.bf16.msra.mxu0 %v320_v3  ;;  %v332_v12 = vpack.c.bf16 %v71_v11, %v70_v10  ;;  %v164_v15 = vld [vmem:[#allocation7 + $0x8] sm:$0xff]  ;;  %v274_v17 = vld [vmem:[%s553_s2] ss:$0 sm:$0xff]  ;;  %s412_s2 = scalar_lea.vmem %s262_s10, 256 }
  0x3b   :  { %325 = vmatprep.subr.bf16.mxu0 %v324_v5  ;;  %v336_v16 = vpack.c.bf16 %v164_v15, %v163_v14  ;;  %v277_v24 = vld [vmem:[%s555_s4] ss:$0 sm:$0xff]  ;;  %p413_p10 = scmp.ne.s32.totalorder %s262_s10, %s412_s2  ;;  %p418_p12 = scmp.lt.s32.totalorder %s412_s2, %s412_s2 }
  0x3d   :  { %337 = vmatprep.subr.bf16.mxu1 %v336_v16  ;;  %p419_p13 = por %p418_p12, %p417_p11 }
  0x3e   :  { %327 = vmatpush3.bf16.msra.mxu0 %v324_v5  ;;  %339 = vmatpush3.bf16.msra.mxu1 %v336_v16 }
  0x3f   :  { %329 = vmatprep.subr.bf16.mxu0 %v328_v9  ;;  %p420_p0 = pnand %p419_p13, %p413_p10 }
  0x42   :  { %331 = vmatpush3.bf16.msra.mxu0 %v328_v9 }
  0x43   :  { %333 = vmatprep.subr.bf16.mxu0 %v332_v12 }
  0x46   :  { %335 = vmatpush3.bf16.msra.mxu0 %v332_v12 }
  0x49   :  { %311 = vmatmul.mubr.msk.f32.vlgmr.msra.gmra.mrb[0].mxu0 %vm79_vm0, %v63_v13 }
 0x11c   :  { %v312_v18 = vpop.f32.mrb[0].mxu0 }
 0x11d   :  { %v158_v19 = vadd.f32 %v312_v18, %v274_v17  ;;  %v152_v20 = vpop.f32.mrb[1].mxu0 }
 0x11e   :  { %v153_v21 = vadd.f32 %v274_v17, %v152_v20 }
 0x11f   :  { %v162_v23 = vmax.f32 %v158_v19, 0.0 }
 0x120   :  { %v161_v22 = vmax.f32 %v153_v21, 0.0 }
 0x122   :  { %317 = vmatprep.mubr.msk.f32.mxu1 %vm172_vm1, %v161_v22 }
 0x123   :  { %318 = vmatmul.mubr.msk.f32.vlgmr.msra.gmra.mrb[0].mxu1 %vm172_vm1, %v162_v23 }
 0x1f6   :  { %v319_v25 = vpop.f32.mrb[0].mxu1 }
 0x1f7   :  { %v251_v26 = vadd.f32 %v319_v25, %v277_v24  ;;  %v245_v27 = vpop.f32.mrb[1].mxu1 }
 0x1f8   :  { %v246_v28 = vadd.f32 %v277_v24, %v245_v27 }
 0x1f9   :  { %255 = vst [vmem:[#allocation8 + $0x8] sm:$0xff] %v251_v26 }
 0x1fa   :  { %254 = vst [vmem:[#allocation8] sm:$0xff] %v246_v28 }
 0x1fb   :  { %423 = shalt.err (!%p420_p0)
}
 0x1fc   :  { %s424_s4 = scalar_lea.hbm %s556_s5, 256 }
 0x1fd   :  { %p425_p1 = scmp.ne.s32.totalorder %s556_s5, %s424_s4  ;;  %p428_p2 = scmp.lt.u32.totalorder %s424_s4, %s556_s5 }
 0x1ff   :  { %p430_p3 = pnand %p428_p2, %p425_p1 }
 0x201   :  { %433 = shalt.err (!%p430_p3)
}
 0x202   :  { %267 = dma.vmem_to_hbm [thread:$0]  %s262_s10, 256, %s556_s5, [#allocation4], %s442_s30, %s442_s30, %s443_s6  }
 0x203   :  { %438 = dma.done.wait [#allocation4], 256  }
 0x204   :  { %439 = vsyncadd [#allocation4], 4294967040 }
 0x205   :  { %271 = vsyncpa [#allocation3], 1 }
 0x206   :  { %272 = vsyncpa [#allocation6], 1 }
 0x207   :  { %273 = vsyncpa [#allocation4], 1 }

</bundles_post_ra>
